<compile_context>
chip_gen: v5e
topology: v5e:2x2
jax: 0.10.0
libtpu: 0.0.40
codegen_flags: <defaults>
</compile_context>

<pallas_src>
import functools

import numpy as np
import jax
import jax.numpy as jnp
from jax import lax
from jax.experimental import pallas as pl
from jax.experimental.pallas import tpu as pltpu


def _triplet_mask_kernel(valid_col_ref, valid_row_ref, src_col_ref, src_row_ref,
                         out_ref, *, tm, tn):
    """One (tm, tn) tile of the pairwise triplet mask.

    valid_col_ref: [tm, 1] int32   per-edge validity for the row ("ij") edges
    valid_row_ref: [1, tn] int32   per-edge validity for the col ("kj") edges
    src_col_ref  : [tm, 1] int32   edge_index[0] for the row edges
    src_row_ref  : [1, tn] int32   edge_index[0] for the col edges
    out_ref      : [tm, tn] int8   mask tile
    """
    i = pl.program_id(0)
    j = pl.program_id(1)

    # Both edges within cutoff (padded edges have valid == 0 -> excluded here).
    valid = (valid_col_ref[...] != 0) & (valid_row_ref[...] != 0)   # [tm, tn]

    # Same source node (edge_index[0]) for both edges of the pair.
    same_src = src_col_ref[...] == src_row_ref[...]                 # [tm, tn]

    # Drop e1 == e2 (global indices, so offset the per-tile iotas).
    row_id = i * tm + lax.broadcasted_iota(jnp.int32, (tm, tn), 0)
    col_id = j * tn + lax.broadcasted_iota(jnp.int32, (tm, tn), 1)
    not_self = row_id != col_id

    out_ref[...] = (valid & same_src & not_self).astype(jnp.int8)


def _pick_tile(total, candidates):
    """Largest candidate tile that divides `total` (total is a multiple of 128)."""
    for c in candidates:
        if c <= total and total % c == 0:
            return c
    return total


def triplets(vec, edge_index, n_atoms, cutoff, max_triplets=None):
    """Pallas implementation of Triplets.forward.

    Returns (idx_ij, idx_kj, n_triplets): padded int32 index arrays of length
    `max_triplets` (fill -1) and the true number of triplets.
    """
    del n_atoms  # adjacency size is not needed in the dense-pair formulation
    n_bond = int(vec.shape[0])
    e_pad = max(128, ((n_bond + 127) // 128) * 128)
    pad = e_pad - n_bond

    # --- glue: O(E) per-edge work done in plain JAX (fused by XLA) ---
    vec_f32 = vec.astype(jnp.float32)
    sq_dist = jnp.sum(vec_f32 * vec_f32, axis=1)                       # [n_bond]
    valid = (sq_dist <= jnp.float32(cutoff) * jnp.float32(cutoff)).astype(jnp.int32)
    valid_pad = jnp.concatenate([valid, jnp.zeros((pad,), jnp.int32)])  # pads invalid
    src = edge_index[0].astype(jnp.int32)
    src_pad = jnp.concatenate([src, jnp.full((pad,), -1, jnp.int32)])

    valid_col = valid_pad.reshape(e_pad, 1)
    valid_row = valid_pad.reshape(1, e_pad)
    src_col = src_pad.reshape(e_pad, 1)
    src_row = src_pad.reshape(1, e_pad)

    # Tile sizes: lane-dense output (TN large multiple of 128), TM multiple of 8.
    # Worst case VMEM for output: 512*1024 int8 = 512 KiB/tile * 2 buffers = 1 MiB,
    # far below the v7x 64 MiB physical VMEM.
    tm = _pick_tile(e_pad, (512, 256, 128))
    tn = _pick_tile(e_pad, (1024, 512, 256, 128))

    # --- Pallas kernel: tiled pairwise mask construction ---
    mask = pl.pallas_call(
        functools.partial(_triplet_mask_kernel, tm=tm, tn=tn),
        out_shape=jax.ShapeDtypeStruct((e_pad, e_pad), jnp.int8),
        grid=(e_pad // tm, e_pad // tn),
        in_specs=[
            pl.BlockSpec((tm, 1), lambda i, j: (i, 0)),
            pl.BlockSpec((1, tn), lambda i, j: (0, j)),
            pl.BlockSpec((tm, 1), lambda i, j: (i, 0)),
            pl.BlockSpec((1, tn), lambda i, j: (0, j)),
        ],
        out_specs=pl.BlockSpec((tm, tn), lambda i, j: (i, j)),
        compiler_params=pltpu.CompilerParams(
            dimension_semantics=("parallel", "parallel"),
            vmem_limit_bytes=32 << 20),
    )(valid_col, valid_row, src_col, src_row)

    if max_triplets is None:
        # TODO(synk): n_bond**2 is a loose bound; for large graphs pass a realistic
        # max_triplets (e.g. n_bond * max_degree) so the host-side compaction does
        # not dominate wall clock.
        max_triplets = n_bond * n_bond

    # --- glue: compact the boolean pair matrix into index lists ---
    # torch returns dynamically sized int64 tensors; here we emit fixed-size int32
    # arrays padded with -1 plus the true count (row-major pair order; the set of
    # triplets is identical to the torch implementation). Note: if the true count
    # exceeds a user-supplied max_triplets the index arrays are truncated while
    # n_triplets reports the real total.
    idx_ij, idx_kj = jnp.nonzero(mask, size=max_triplets, fill_value=-1)
    n_triplets = jnp.sum(mask, dtype=jnp.int32)
    return idx_ij.astype(jnp.int32), idx_kj.astype(jnp.int32), n_triplets


if __name__ == "__main__":
    key = jax.random.PRNGKey(0)
    n_atoms = 6
    cutoff = 1.2

    # All directed pairs i != j among n_atoms atoms -> undirected edge set.
    ii, jj = np.meshgrid(np.arange(n_atoms), np.arange(n_atoms), indexing="ij")
    sel = ii != jj
    edge_index_np = np.stack([ii[sel], jj[sel]], axis=0).astype(np.int32)  # [2, 30]
    n_bond = edge_index_np.shape[1]

    pos = jax.random.uniform(key, (n_atoms, 3), dtype=jnp.float32) * 2.0
    vec = pos[edge_index_np[1]] - pos[edge_index_np[0]]          # [n_bond, 3]
    edge_index = jnp.asarray(edge_index_np)

    idx_ij, idx_kj, n_trip = triplets(vec, edge_index, n_atoms, cutoff)
    idx_ij = jax.block_until_ready(idx_ij)
    idx_kj = jax.block_until_ready(idx_kj)
    n_trip = int(jax.block_until_ready(n_trip))

    # Pure numpy reference of the torch semantics (as a set of pairs).
    vec_np = np.asarray(vec)
    dist = np.linalg.norm(vec_np, axis=1)
    valid = dist <= cutoff
    ref_pairs = {
        (p, q)
        for p in range(n_bond)
        for q in range(n_bond)
        if p != q and valid[p] and valid[q]
        and edge_index_np[0, p] == edge_index_np[0, q]
    }
    got_pairs = set(zip(np.asarray(idx_ij)[:n_trip].tolist(),
                        np.asarray(idx_kj)[:n_trip].tolist()))
    assert n_trip == len(ref_pairs), (n_trip, len(ref_pairs))
    assert got_pairs == ref_pairs
    assert np.all(np.asarray(idx_ij)[n_trip:] == -1)

    print("KERNEL_OK")
</pallas_src>

<mosaic_0001>
module attributes {stable_mosaic.version = 11 : i64} {
  func.func @_triplet_mask_kernel(%arg0: i32, %arg1: i32, %arg2: memref<128x1xi32, #tpu.memory_space<vmem>>, %arg3: memref<1x128xi32, #tpu.memory_space<vmem>>, %arg4: memref<128x1xi32, #tpu.memory_space<vmem>>, %arg5: memref<1x128xi32, #tpu.memory_space<vmem>>, %arg6: memref<128x128xi8, #tpu.memory_space<vmem>>) attributes {dimension_semantics = [#tpu.dimension_semantics<parallel>, #tpu.dimension_semantics<parallel>], iteration_bounds = array<i64: 1, 1>, scalar_prefetch = 0 : i64, scratch_operands = 0 : i64, tpu.core_type = #tpu.core_type<tc>, window_params = [{transform_indices = @transform_0, window_bounds = array<i64: 128, 1>}, {transform_indices = @transform_1, window_bounds = array<i64: 1, 128>}, {transform_indices = @transform_2, window_bounds = array<i64: 128, 1>}, {transform_indices = @transform_3, window_bounds = array<i64: 1, 128>}, {transform_indices = @transform_4, window_bounds = array<i64: 128, 128>}]} {
    %c0 = arith.constant 0 : index
    %c0_0 = arith.constant 0 : index
    %0 = vector.load %arg2[%c0, %c0_0] : memref<128x1xi32, #tpu.memory_space<vmem>>, vector<128x1xi32>
    %c0_i32 = arith.constant 0 : i32
    %1 = vector.broadcast %c0_i32 : i32 to vector<128x1xi32>
    %2 = arith.cmpi ne, %0, %1 : vector<128x1xi32>
    %c0_1 = arith.constant 0 : index
    %c0_2 = arith.constant 0 : index
    %3 = vector.load %arg3[%c0_1, %c0_2] : memref<1x128xi32, #tpu.memory_space<vmem>>, vector<1x128xi32>
    %c0_i32_3 = arith.constant 0 : i32
    %4 = vector.broadcast %c0_i32_3 : i32 to vector<1x128xi32>
    %5 = arith.cmpi ne, %3, %4 : vector<1x128xi32>
    %6 = vector.broadcast %2 : vector<128x1xi1> to vector<128x128xi1>
    %7 = vector.broadcast %5 : vector<1x128xi1> to vector<128x128xi1>
    %8 = arith.andi %6, %7 : vector<128x128xi1>
    %c0_4 = arith.constant 0 : index
    %c0_5 = arith.constant 0 : index
    %9 = vector.load %arg4[%c0_4, %c0_5] : memref<128x1xi32, #tpu.memory_space<vmem>>, vector<128x1xi32>
    %c0_6 = arith.constant 0 : index
    %c0_7 = arith.constant 0 : index
    %10 = vector.load %arg5[%c0_6, %c0_7] : memref<1x128xi32, #tpu.memory_space<vmem>>, vector<1x128xi32>
    %11 = vector.broadcast %9 : vector<128x1xi32> to vector<128x128xi32>
    %12 = vector.broadcast %10 : vector<1x128xi32> to vector<128x128xi32>
    %13 = arith.cmpi eq, %11, %12 : vector<128x128xi32>
    %c128_i32 = arith.constant 128 : i32
    %14 = arith.muli %arg0, %c128_i32 : i32
    %15 = tpu.iota {dimensions = array<i32: 0>} : vector<128x128xi32>
    %16 = vector.broadcast %14 : i32 to vector<128x128xi32>
    %17 = arith.addi %16, %15 : vector<128x128xi32>
    %c128_i32_8 = arith.constant 128 : i32
    %18 = arith.muli %arg1, %c128_i32_8 : i32
    %19 = tpu.iota {dimensions = array<i32: 1>} : vector<128x128xi32>
    %20 = vector.broadcast %18 : i32 to vector<128x128xi32>
    %21 = arith.addi %20, %19 : vector<128x128xi32>
    %22 = arith.cmpi ne, %17, %21 : vector<128x128xi32>
    %23 = arith.andi %8, %13 : vector<128x128xi1>
    %24 = arith.andi %23, %22 : vector<128x128xi1>
    %25 = arith.extui %24 : vector<128x128xi1> to vector<128x128xi8>
    %c0_9 = arith.constant 0 : index
    %c0_10 = arith.constant 0 : index
    %26 = vector.load %arg6[%c0_9, %c0_10] : memref<128x128xi8, #tpu.memory_space<vmem>>, vector<128x128xi8>
    tpu.vector_store %arg6[%c0_9, %c0_10], %25 {strides = array<i32>} : memref<128x128xi8, #tpu.memory_space<vmem>>, vector<128x128xi8>,
    return
  }
  func.func @transform_0(%arg0: i32, %arg1: i32) -> (i32, i32) {
    %c0_i32 = arith.constant 0 : i32
    %c0_i32_0 = arith.constant 0 : i32
    return %arg0, %c0_i32 : i32, i32
  }
  func.func @transform_1(%arg0: i32, %arg1: i32) -> (i32, i32) {
    %c0_i32 = arith.constant 0 : i32
    %c0_i32_0 = arith.constant 0 : i32
    return %c0_i32, %arg1 : i32, i32
  }
  func.func @transform_2(%arg0: i32, %arg1: i32) -> (i32, i32) {
    %c0_i32 = arith.constant 0 : i32
    %c0_i32_0 = arith.constant 0 : i32
    return %arg0, %c0_i32 : i32, i32
  }
  func.func @transform_3(%arg0: i32, %arg1: i32) -> (i32, i32) {
    %c0_i32 = arith.constant 0 : i32
    %c0_i32_0 = arith.constant 0 : i32
    return %c0_i32, %arg1 : i32, i32
  }
  func.func @transform_4(%arg0: i32, %arg1: i32) -> (i32, i32) {
    %c0_i32 = arith.constant 0 : i32
    return %arg0, %arg1 : i32, i32
  }
}

</mosaic_0001>

<bundles_post_ra>
// kernel: tpu_custom_call.1
= control target key start
LH: loop header
LB: loop body
LE: loop exit
PB: predicated region body
PF: predicated region fallthrough
CT: control target
= control target key end

     0   :  { %v407_v3 = vmov 0   ;;  %s844_s0 = inlined_call_operand.vmem [shape: s32[128,1], index: 0, kind: input, shape index: {}]   ;;  %s845_s1 = inlined_call_operand.vmem [shape: s32[1,128], index: 1, kind: input, shape index: {}]   ;;  %s846_s2 = inlined_call_operand.vmem [shape: s32[128,1], index: 2, kind: input, shape index: {}]   ;;  %s847_s3 = inlined_call_operand.vmem [shape: s32[1,128], index: 3, kind: input, shape index: {}]   ;;  %s848_s4 = inlined_call_operand.hbm [shape: s8[128,128], index: 4, kind: output, shape index: {}]  }
   0x1   :  { %v24_v0 = vld [vmem:[%s844_s0 + $0x20] sm:$0xff]  ;;  %v22_v1 = vld [vmem:[%s844_s0 + $0x10] sm:$0xff]  ;;  %379 = vset.pattern.permute.xlu2 %v407_v3  ;;  %378 = vset.pattern.permute.xlu1 %v407_v3  ;;  %v25_v7 = vld [vmem:[%s844_s0 + $0x28] sm:$0xff] }
   0x2   :  { %v20_v2 = vld [vmem:[%s844_s0] sm:$0xff]  ;;  %vm40_vm0 = vcmp.ne.s32.totalorder %v24_v0, 0  ;;  %vm38_vm1 = vcmp.ne.s32.totalorder %v22_v1, 0  ;;  %377 = vset.pattern.permute.xlu0 %v407_v3  ;;  %v23_v8 = vld [vmem:[%s844_s0 + $0x18] sm:$0xff]  ;;  %v21_v9 = vld [vmem:[%s844_s0 + $0x8] sm:$0xff]  ;;  %vm41_vm3 = vcmp.ne.s32.totalorder %v25_v7, 0 }
   0x3   :  { %vm36_vm2 = vcmp.ne.s32.totalorder %v20_v2, 0  ;;  %v58_v4 = vsel %vm40_vm0, 1, %v407_v3  ;;  %v56_v5 = vsel %vm38_vm1, 1, %v407_v3  ;;  %vm39_vm4 = vcmp.ne.s32.totalorder %v23_v8, 0 }
   0x4   :  { %v54_v6 = vsel %vm36_vm2, 1, %v407_v3  ;;  %83 = vperm.xlu2 %379, %v58_v4   ;;  %77 = vperm.xlu1 %378, %v56_v5   ;;  %vm37_vm5 = vcmp.ne.s32.totalorder %v21_v9, 0  ;;  %v59_v10 = vsel %vm41_vm3, 1, %v407_v3  ;;  %v57_v11 = vsel %vm39_vm4, 1, %v407_v3 }
   0x5   :  { %71 = vperm.xlu0 %377, %v54_v6  }
   0x6   :  { %9 = vsyncpa [#allocation3], 0  ;;  %v55_v12 = vsel %vm37_vm5, 1, %v407_v3  ;;  %v28_v13 = vld [vmem:[%s844_s0 + $0x40] sm:$0xff]  ;;  %v27_v14 = vld [vmem:[%s844_s0 + $0x38] sm:$0xff]  ;;  %v236_v1 = vlaneseq  ;;  %v852_v9 = vmov 0 }
   0x7   :  { %v26_v15 = vld [vmem:[%s844_s0 + $0x30] sm:$0xff]  ;;  %vm44_vm6 = vcmp.ne.s32.totalorder %v28_v13, 0  ;;  %vm43_vm7 = vcmp.ne.s32.totalorder %v27_v14, 0  ;;  %v31_v19 = vld [vmem:[%s844_s0 + $0x58] sm:$0xff]  ;;  %v29_v21 = vld [vmem:[%s844_s0 + $0x48] sm:$0xff]  ;;  %s361_s30 = sshll.u32 %s848_s4, 4  ;;  %s362_s30 = int_to_ptr.hbm [resolvable:$true] %s361_s30 }
   0x8   :  { %vm42_vm8 = vcmp.ne.s32.totalorder %v26_v15, 0  ;;  %v62_v16 = vsel %vm44_vm6, 1, %v407_v3  ;;  %v61_v17 = vsel %vm43_vm7, 1, %v407_v3  ;;  %v30_v20 = vld [vmem:[%s844_s0 + $0x50] sm:$0xff]  ;;  %vm47_vm9 = vcmp.ne.s32.totalorder %v31_v19, 0  ;;  %v33_v26 = vld [vmem:[%s844_s0 + $0x68] sm:$0xff] }
   0x9   :  { %v60_v18 = vsel %vm42_vm8, 1, %v407_v3  ;;  %vm46_vm10 = vcmp.ne.s32.totalorder %v30_v20, 0  ;;  %vm45_vm11 = vcmp.ne.s32.totalorder %v29_v21, 0  ;;  %v65_v22 = vsel %vm47_vm9, 1, %v407_v3  ;;  %v34_v25 = vld [vmem:[%s844_s0 + $0x70] sm:$0xff]  ;;  %v32_v27 = vld [vmem:[%s844_s0 + $0x60] sm:$0xff] }
   0xa   :  { %v64_v23 = vsel %vm46_vm10, 1, %v407_v3  ;;  %v63_v24 = vsel %vm45_vm11, 1, %v407_v3  ;;  %vm50_vm12 = vcmp.ne.s32.totalorder %v34_v25, 0  ;;  %vm49_vm13 = vcmp.ne.s32.totalorder %v33_v26, 0  ;;  %v35_v31 = vld [vmem:[%s844_s0 + $0x78] sm:$0xff]  ;;  %v154_v32 = vld [vmem:[%s846_s2 + $0x8] sm:$0xff] }
   0xb   :  { %vm48_vm14 = vcmp.ne.s32.totalorder %v32_v27, 0  ;;  %v68_v28 = vsel %vm50_vm12, 1, %v407_v3  ;;  %v67_v29 = vsel %vm49_vm13, 1, %v407_v3  ;;  %vm51_vm15 = vcmp.ne.s32.totalorder %v35_v31, 0  ;;  %v153_v33 = vld [vmem:[%s846_s2] sm:$0xff]  ;;  %v156_v36 = vld [vmem:[%s846_s2 + $0x18] sm:$0xff] }
   0xc   :  { %86 = vperm.xlu2 %379, %v59_v10   ;;  %80 = vperm.xlu1 %378, %v57_v11   ;;  %v66_v30 = vsel %vm48_vm14, 1, %v407_v3  ;;  %v69_v34 = vsel %vm51_vm15, 1, %v407_v3  ;;  %v157_v35 = vld [vmem:[%s846_s2 + $0x20] sm:$0xff]  ;;  %v155_v37 = vld [vmem:[%s846_s2 + $0x10] sm:$0xff]  ;;  %v160_v38 = vld [vmem:[%s846_s2 + $0x38] sm:$0xff]  ;;  %v571_v7 = vshrl.u32 %v236_v1, 7 }
   0xd   :  { %74 = vperm.xlu0 %377, %v55_v12   ;;  %v159_v39 = vld [vmem:[%s846_s2 + $0x30] sm:$0xff]  ;;  %v158_v40 = vld [vmem:[%s846_s2 + $0x28] sm:$0xff]  ;;  %v161_v43 = vld [vmem:[%s846_s2 + $0x40] sm:$0xff]  ;;  %v583_v11 = vand.u32 127, %v236_v1  ;;  %v862_v21 = vmov 0  ;;  %v866_v27 = vmov 0 }
   0xe   :  { %v163_v41 = vld [vmem:[%s846_s2 + $0x50] sm:$0xff]  ;;  %v162_v42 = vld [vmem:[%s846_s2 + $0x48] sm:$0xff]  ;;  %v165_v45 = vld [vmem:[%s846_s2 + $0x60] sm:$0xff]  ;;  %v238_v10 = vadd.s32 8, %v571_v7  ;;  %v240_v19 = vadd.s32 24, %v571_v7  ;;  %v241_v20 = vadd.s32 32, %v571_v7 }
   0xf   :  { %v166_v44 = vld [vmem:[%s846_s2 + $0x68] sm:$0xff]  ;;  %v164_v46 = vld [vmem:[%s846_s2 + $0x58] sm:$0xff]  ;;  %v167_v48 = vld [vmem:[%s846_s2 + $0x70] sm:$0xff]  ;;  %v244_v26 = vadd.s32 56, %v571_v7  ;;  %v242_v31 = vadd.s32 40, %v571_v7  ;;  %s409_s5 = smov 128  }
  0x10   :  { %v168_v47 = vld [vmem:[%s846_s2 + $0x78] sm:$0xff]  ;;  %v52_v62 = vld [vmem:[%s845_s1] sm:$0x1]  ;;  %vm276_vm12 = vcmp.ne.s32.totalorder %v238_v10, %v583_v11  ;;  %s408_s1 = smov [#allocation2]   ;;  %s410_s6 = smov 8  }
  0x11   :  { %vm53_vm0 = vcmp.ne.s32.totalorder %v52_v62, 0  ;;  %v576_v8 = vld [vmem:[%s847_s3] ss:$0 sm:$0xff]  ;;  %s359_s3 = sshll.u32 %s408_s1, 4  ;;  %s360_s3 = int_to_ptr.vmem [resolvable:$true] %s359_s3 }
  0x12   :  { %v134_v0 = vsel %vm53_vm0, 1, %v407_v3 }
  0x13   :  { %v135_v5 = vperm.slane %v134_v0, 0  ;;  %v250_v0 = vadd.s32 104, %v571_v7 }
  0x14   :  { %95 = vperm.xlu2 %379, %v62_v16   ;;  %92 = vperm.xlu1 %378, %v61_v17   ;;  %v858_v17 = vmov 0 }
  0x15   :  { %89 = vperm.xlu0 %377, %v60_v18   ;;  %vm578_vm2 = vcmp.eq.s32.totalorder %v135_v5, 1  ;;  %v252_v5 = vadd.s32 120, %v571_v7 }
  0x16   :  { %v853_v9 = vsel %vm578_vm2, 4294967295, %v852_v9 }
  0x1c   :  { %104 = vperm.xlu2 %379, %v65_v22   ;;  %101 = vperm.xlu1 %378, %v64_v23   ;;  %v239_v23 = vadd.s32 16, %v571_v7 }
  0x1d   :  { %98 = vperm.xlu0 %377, %v63_v24   ;;  %v864_v24 = vmov 0 }
  0x24   :  { %113 = vperm.xlu2 %379, %v68_v28   ;;  %110 = vperm.xlu1 %378, %v67_v29   ;;  %v868_v28 = vmov 0  ;;  %v243_v29 = vadd.s32 48, %v571_v7 }
  0x25   :  { %107 = vperm.xlu0 %377, %v66_v30  }
  0x2c   :  { %174 = vperm.xlu2 %379, %v154_v32   ;;  %171 = vperm.xlu1 %378, %v153_v33  }
  0x2d   :  { %116 = vperm.xlu0 %377, %v69_v34  }
  0x34   :  { %183 = vperm.xlu2 %379, %v157_v35   ;;  %180 = vperm.xlu1 %378, %v156_v36  }
  0x35   :  { %177 = vperm.xlu0 %377, %v155_v37  }
  0x3c   :  { %192 = vperm.xlu2 %379, %v160_v38   ;;  %189 = vperm.xlu1 %378, %v159_v39  }
  0x3d   :  { %186 = vperm.xlu0 %377, %v158_v40  }
  0x44   :  { %201 = vperm.xlu2 %379, %v163_v41   ;;  %198 = vperm.xlu1 %378, %v162_v42  }
  0x45   :  { %195 = vperm.xlu0 %377, %v161_v43   ;;  %v247_v43 = vadd.s32 80, %v571_v7 }
  0x4c   :  { %210 = vperm.xlu2 %379, %v166_v44   ;;  %207 = vperm.xlu1 %378, %v165_v45  }
  0x4d   :  { %204 = vperm.xlu0 %377, %v164_v46   ;;  %v246_v46 = vadd.s32 72, %v571_v7 }
  0x54   :  { %216 = vperm.xlu1 %378, %v168_v47  }
  0x55   :  { %213 = vperm.xlu0 %377, %v167_v48  }
  0x5e   :  { %v84_v49 = vpop.permute.xlu2 %83 }
  0x5f   :  { %vm122_vm1 = vcmp.eq.s32.totalorder %v84_v49, 1 }
  0x60   :  { %vm587_vm5 = vmand %vm122_vm1, %vm578_vm2  ;;  %vm275_vm1 = vcmp.ne.s32.totalorder %v571_v7, %v583_v11 }
  0x66   :  { %v551_v50 = vpop.permute.xlu2 %86 }
  0x6e   :  { %v553_v51 = vpop.permute.xlu2 %95 }
  0x76   :  { %v78_v52 = vpop.permute.xlu1 %77  ;;  %v555_v54 = vpop.permute.xlu2 %104 }
  0x77   :  { %v72_v53 = vpop.permute.xlu0 %71  ;;  %vm120_vm9 = vcmp.eq.s32.totalorder %v78_v52, 1  ;;  %v889_v52 = vmov 0 }
  0x78   :  { %vm118_vm3 = vcmp.eq.s32.totalorder %v72_v53, 1  ;;  %vm608_vm0 = vmand %vm120_vm9, %vm578_vm2 }
  0x79   :  { %vm137_vm7 = vmand %vm118_vm3, %vm578_vm2  ;;  %v859_v17 = vsel %vm608_vm0, 4294967295, %v858_v17 }
  0x7e   :  { %v81_v55 = vpop.permute.xlu1 %80  ;;  %v557_v57 = vpop.permute.xlu2 %113 }
  0x7f   :  { %v75_v56 = vpop.permute.xlu0 %74  ;;  %vm121_vm8 = vcmp.eq.s32.totalorder %v81_v55, 1 }
  0x80   :  { %vm119_vm4 = vcmp.eq.s32.totalorder %v75_v56, 1  ;;  %vm602_vm14 = vmand %vm121_vm8, %vm578_vm2  ;;  %v249_v56 = vadd.s32 96, %v571_v7 }
  0x81   :  { %vm138_vm10 = vmand %vm119_vm4, %vm578_vm2 }
  0x86   :  { %v93_v58 = vpop.permute.xlu1 %92  ;;  %v175_v60 = vpop.permute.xlu2 %174 }
  0x87   :  { %v90_v59 = vpop.permute.xlu0 %89  ;;  %vm220_vm6 = vcmp.eq.s32.totalorder %v175_v60, %v576_v8  ;;  %vm125_vm15 = vcmp.eq.s32.totalorder %v93_v58, 1  ;;  %v248_v60 = vadd.s32 88, %v571_v7 }
  0x88   :  { %vm292_vm13 = vmand %vm138_vm10, %vm220_vm6  ;;  %vm124_vm6 = vcmp.eq.s32.totalorder %v90_v59, 1 }
  0x89   :  { %vm614_vm4 = vmand %vm292_vm13, %vm276_vm12 }
  0x8a   :  { %vm144_vm10 = vmand %vm125_vm15, %vm578_vm2 }
  0x8e   :  { %v559_v61 = vpop.permute.xlu1 %101  ;;  %v184_v6 = vpop.permute.xlu2 %183 }
  0x8f   :  { %v564_v63 = vpop.permute.xlu0 %98  ;;  %vm223_vm8 = vcmp.eq.s32.totalorder %v184_v6, %v576_v8  ;;  %v251_v6 = vadd.s32 112, %v571_v7 }
  0x90   :  { %vm295_vm12 = vmand %vm587_vm5, %vm223_vm8 }
  0x96   :  { %v567_v2 = vpop.permute.xlu1 %110  ;;  %v193_v16 = vpop.permute.xlu2 %192 }
  0x97   :  { %v569_v4 = vpop.permute.xlu0 %107  ;;  %vm226_vm9 = vcmp.eq.s32.totalorder %v193_v16, %v576_v8 }
  0x98   :  { %vm640_vm15 = vmand %vm144_vm10, %vm226_vm9  ;;  %vm277_vm9 = vcmp.ne.s32.totalorder %v239_v23, %v583_v11 }
  0x99   :  { %v867_v27 = vsel %vm640_vm15, 4294967295, %v866_v27 }
  0x9e   :  { %v172_v13 = vpop.permute.xlu1 %171  ;;  %v202_v34 = vpop.permute.xlu2 %201 }
  0x9f   :  { %v594_v14 = vpop.permute.xlu0 %116  ;;  %vm219_vm11 = vcmp.eq.s32.totalorder %v172_v13, %v576_v8 }
  0xa0   :  { %vm291_vm3 = vmand %vm137_vm7, %vm219_vm11  ;;  %vm123_vm7 = vcmp.eq.s32.totalorder %v551_v50, 1  ;;  %v245_v50 = vadd.s32 64, %v571_v7 }
  0xa1   :  { %vm624_vm0 = vmand %vm291_vm3, %vm275_vm1  ;;  %vm278_vm1 = vcmp.ne.s32.totalorder %v240_v19, %v583_v11  ;;  %vm279_vm3 = vcmp.ne.s32.totalorder %v241_v20, %v583_v11 }
  0xa2   :  { %v863_v21 = vsel %vm624_vm0, 4294967295, %v862_v21  ;;  %vm632_vm11 = vmand %vm124_vm6, %vm578_vm2  ;;  %vm282_vm6 = vcmp.ne.s32.totalorder %v244_v26, %v583_v11  ;;  %vm872_vm0 = vnez %v859_v17 }
  0xa3   :  { %v865_v24 = vsel %vm632_vm11, 4294967295, %v864_v24  ;;  %vm653_vm8 = vmand %vm123_vm7, %vm578_vm2  ;;  %vm128_vm2 = vcmp.eq.s32.totalorder %v559_v61, 1 }
  0xa4   :  { %v869_v28 = vsel %vm653_vm8, 4294967295, %v868_v28  ;;  %vm661_vm15 = vmand %vm295_vm12, %vm279_vm3  ;;  %vm873_vm12 = vnez %v867_v27 }
  0xa5   :  { %vm674_vm3 = vmand %vm873_vm12, %vm282_vm6  ;;  %vm881_vm6 = vnez %v865_v24 }
  0xa6   :  { %v181_v22 = vpop.permute.xlu1 %180  ;;  %v211_v53 = vpop.permute.xlu2 %210 }
  0xa7   :  { %vm222_vm13 = vcmp.eq.s32.totalorder %v181_v22, %v576_v8  ;;  %v178_v25 = vpop.permute.xlu0 %177 }
  0xa8   :  { %vm221_vm5 = vcmp.eq.s32.totalorder %v178_v25, %v576_v8  ;;  %vm294_vm10 = vmand %vm602_vm14, %vm222_vm13  ;;  %vm281_vm13 = vcmp.ne.s32.totalorder %v243_v29, %v583_v11 }
  0xa9   :  { %vm310_vm11 = vmand %vm294_vm10, %vm278_vm1  ;;  %vm126_vm1 = vcmp.eq.s32.totalorder %v553_v51, 1 }
  0xaa   :  { %vm293_vm7 = vmand %vm872_vm0, %vm221_vm5  ;;  %vm876_vm0 = vnez %v863_v21 }
  0xab   :  { %vm309_vm8 = vmand %vm293_vm7, %vm277_vm9 }
  0xac   :  { %vm324_vm14 = vmpackc.low %vm310_vm11, %vm309_vm8  ;;  %vm878_vm8 = vnez %v853_v9 }
  0xad   :  { %vm877_vm5 = vmpackc.low %vm614_vm4, %vm876_vm0  ;;  %v326_v36 = vsel %vm324_vm14, 16711935, %v407_v3  ;;  %vm280_vm4 = vcmp.ne.s32.totalorder %v242_v31, %v583_v11 }
  0xae   :  { %v190_v32 = vpop.permute.xlu1 %189  ;;  %v325_v35 = vsel %vm877_vm5, 16711935, %v407_v3  ;;  %vm688_vm10 = vmand %vm128_vm2, %vm878_vm8  ;;  %vm127_vm5 = vcmp.eq.s32.totalorder %v564_v63, 1 }
  0xaf   :  { %vm225_vm11 = vcmp.eq.s32.totalorder %v190_v32, %v576_v8  ;;  %v187_v37 = vpop.permute.xlu0 %186  ;;  %v327_v39 = vpack.c.b8 %v326_v36, %v325_v35  ;;  %vm698_vm14 = vmand %vm126_vm1, %vm878_vm8 }
  0xb0   :  { %vm297_vm9 = vmand %vm881_vm6, %vm225_vm11  ;;  %vm224_vm7 = vcmp.eq.s32.totalorder %v187_v37, %v576_v8  ;;  %vm884_vm11 = vnez %v869_v28 }
  0xb1   :  { %vm313_vm12 = vmand %vm297_vm9, %vm281_vm13  ;;  %vm328_vm0 = vnez %v327_v39  ;;  %vm131_vm13 = vcmp.eq.s32.totalorder %v567_v2, 1  ;;  %vm130_vm9 = vcmp.eq.s32.totalorder %v569_v4, 1  ;;  %v904_v2 = vmov 0 }
  0xb2   :  { %vm330_vm2 = vmpackc.low %vm674_vm3, %vm313_vm12  ;;  %v347_v41 = vsel %vm328_vm0, 16843009, %v407_v3 }
  0xb3   :  { %vm296_vm6 = vmand %vm884_vm11, %vm224_vm7  ;;  %351 = vst [vmem:[#allocation2] sm:$0xff] %v347_v41  ;;  %v332_v42 = vsel %vm330_vm2, 16711935, %v407_v3  ;;  %vm229_vm7 = vcmp.eq.s32.totalorder %v202_v34, %v576_v8  ;;  %vm285_vm11 = vcmp.ne.s32.totalorder %v247_v43, %v583_v11 }
  0xb4   :  { %vm312_vm1 = vmand %vm296_vm6, %vm280_vm4  ;;  %vm129_vm4 = vcmp.eq.s32.totalorder %v555_v54, 1  ;;  %v891_v54 = vmov 0 }
  0xb5   :  { %vm329_vm3 = vmpackc.low %vm312_vm1, %vm661_vm15 }
  0xb6   :  { %vm716_vm12 = vmand %vm127_vm5, %vm878_vm8  ;;  %v331_v45 = vsel %vm329_vm3, 16711935, %v407_v3  ;;  %v199_v47 = vpop.permute.xlu1 %198 }
  0xb7   :  { %vm726_vm0 = vmand %vm131_vm13, %vm878_vm8  ;;  %v333_v49 = vpack.c.b8 %v332_v42, %v331_v45  ;;  %vm228_vm15 = vcmp.eq.s32.totalorder %v199_v47, %v576_v8  ;;  %v196_v51 = vpop.permute.xlu0 %195 }
  0xb8   :  { %vm734_vm2 = vmand %vm130_vm9, %vm878_vm8  ;;  %vm227_vm5 = vcmp.eq.s32.totalorder %v196_v51, %v576_v8  ;;  %vm284_vm9 = vcmp.ne.s32.totalorder %v246_v46, %v583_v11 }
  0xb9   :  { %v890_v52 = vsel %vm734_vm2, 4294967295, %v889_v52  ;;  %vm301_vm6 = vmand %vm688_vm10, %vm229_vm7  ;;  %vm334_vm13 = vnez %v333_v49  ;;  %vm283_vm2 = vcmp.ne.s32.totalorder %v245_v50, %v583_v11 }
  0xba   :  { %vm744_vm1 = vmand %vm129_vm4, %vm878_vm8  ;;  %v348_v55 = vsel %vm334_vm13, 16843009, %v407_v3  ;;  %vm133_vm4 = vcmp.eq.s32.totalorder %v594_v14, 1  ;;  %vm232_vm13 = vcmp.eq.s32.totalorder %v211_v53, %v576_v8 }
  0xbb   :  { %v892_v54 = vsel %vm744_vm1, 4294967295, %v891_v54  ;;  %vm300_vm3 = vmand %vm716_vm12, %vm228_vm15  ;;  %352 = vst [vmem:[#allocation2 + $0x8] sm:$0xff] %v348_v55  ;;  %vm132_vm12 = vcmp.eq.s32.totalorder %v557_v57, 1 }
  0xbc   :  { %vm299_vm10 = vmand %vm698_vm14, %vm227_vm5 }
  0xbd   :  { %vm756_vm7 = vmand %vm301_vm6, %vm285_vm11  ;;  %vm903_vm6 = vnez %v890_v52 }
  0xbe   :  { %vm762_vm1 = vmand %vm300_vm3, %vm284_vm9  ;;  %v208_v62 = vpop.permute.xlu1 %207 }
  0xbf   :  { %vm768_vm15 = vmand %vm299_vm10, %vm283_vm2  ;;  %vm287_vm2 = vcmp.ne.s32.totalorder %v249_v56, %v583_v11  ;;  %vm231_vm11 = vcmp.eq.s32.totalorder %v208_v62, %v576_v8  ;;  %v205_v57 = vpop.permute.xlu0 %204 }
  0xc0   :  { %vm774_vm14 = vmand %vm133_vm4, %vm878_vm8  ;;  %vm230_vm3 = vcmp.eq.s32.totalorder %v205_v57, %v576_v8  ;;  %vm286_vm4 = vcmp.ne.s32.totalorder %v248_v60, %v583_v11 }
  0xc1   :  { %vm781_vm5 = vmand %vm726_vm0, %vm232_vm13 }
  0xc2   :  { %vm303_vm9 = vmand %vm903_vm6, %vm231_vm11  ;;  %vm288_vm11 = vcmp.ne.s32.totalorder %v250_v0, %v583_v11 }
  0xc3   :  { %vm792_vm10 = vmand %vm132_vm12, %vm878_vm8  ;;  %vm908_vm8 = vnez %v892_v54 }
  0xc4   :  { %v905_v2 = vsel %vm792_vm10, 4294967295, %v904_v2  ;;  %vm335_vm0 = vmpackc.low %vm762_vm1, %vm768_vm15  ;;  %vm290_vm15 = vcmp.ne.s32.totalorder %v252_v5, %v583_v11 }
  0xc5   :  { %vm801_vm13 = vmand %vm303_vm9, %vm287_vm2  ;;  %v337_v10 = vsel %vm335_vm0, 16711935, %v407_v3  ;;  %vm289_vm9 = vcmp.ne.s32.totalorder %v251_v6, %v583_v11 }
  0xc6   :  { %vm302_vm12 = vmand %vm908_vm8, %vm230_vm3  ;;  %v217_v13 = vpop.permute.xlu1 %216 }
  0xc7   :  { %vm318_vm6 = vmand %vm302_vm12, %vm286_vm4  ;;  %v214_v14 = vpop.permute.xlu0 %213  ;;  %vm911_vm4 = vnez %v905_v2 }
  0xc8   :  { %vm336_vm10 = vmpackc.low %vm318_vm6, %vm756_vm7  ;;  %vm234_vm7 = vcmp.eq.s32.totalorder %v217_v13, %v576_v8  ;;  %vm233_vm3 = vcmp.eq.s32.totalorder %v214_v14, %v576_v8 }
  0xc9   :  { %vm814_vm1 = vmand %vm781_vm5, %vm288_vm11  ;;  %v338_v12 = vsel %vm336_vm10, 16711935, %v407_v3 }
  0xca   :  { %vm341_vm2 = vmpackc.low %vm814_vm1, %vm801_vm13  ;;  %v339_v7 = vpack.c.b8 %v338_v12, %v337_v10 }
  0xcb   :  { %vm306_vm5 = vmand %vm774_vm14, %vm234_vm7  ;;  %v343_v8 = vsel %vm341_vm2, 16711935, %v407_v3 }
  0xcc   :  { %vm340_vm10 = vnez %v339_v7  ;;  %vm322_vm0 = vmand %vm306_vm5, %vm290_vm15 }
  0xcd   :  { %v349_v15 = vsel %vm340_vm10, 16843009, %v407_v3  ;;  %vm305_vm11 = vmand %vm911_vm4, %vm233_vm3 }
  0xce   :  { %353 = vst [vmem:[#allocation2 + $0x10] sm:$0xff] %v349_v15  ;;  %vm321_vm8 = vmand %vm305_vm11, %vm289_vm9 }
  0xcf   :  { %vm342_vm12 = vmpackc.low %vm322_vm0, %vm321_vm8 }
  0xd0   :  { %v344_v11 = vsel %vm342_vm12, 16711935, %v407_v3 }
  0xd1   :  { %v345_v16 = vpack.c.b8 %v344_v11, %v343_v8 }
  0xd3   :  { %vm346_vm14 = vnez %v345_v16 }
  0xd4   :  { %v350_v17 = vsel %vm346_vm14, 16843009, %v407_v3 }
  0xd5   :  { %354 = vst [vmem:[#allocation2 + $0x18] sm:$0xff] %v350_v17 }
  0xd6   :  { %367 = dma.vmem_to_hbm [thread:$0]  %s360_s3, 512, %s362_s30, [#allocation3], %s409_s5, %s409_s5, %s410_s6  }
  0xd7   :  { %405 = dma.done.wait [#allocation3], 512  }
  0xd8   :  { %406 = vsyncadd [#allocation3], 4294966784 }
  0xd9   :  { %372 = vsyncpa [#allocation3], 1 }

</bundles_post_ra>
